<compile_context>
chip_gen: v5e
topology: v5e:2x2
jax: 0.10.0
libtpu: 0.0.40
codegen_flags: <defaults>
</compile_context>

<pallas_src>
import jax
import jax.numpy as jnp
from jax.experimental import pallas as pl
from jax.experimental.pallas import tpu as pltpu


TILE_N_MAX = 1024  # rows per grid step; (1024,128) f32 tile = 512 KiB, trivially fits VMEM.


def _round_up(n, m):
    return ((n + m - 1) // m) * m


def _pose_converter_kernel(
    x_ref,
    w_in_ref, b_in_ref,     # in_proj with BN1 folded in
    w1_ref, b1_ref,         # w2-block first linear (BN folded)
    w2_ref, b2_ref,         # w2-block second linear (BN folded)
    w_out_ref, b_out_ref,   # out_proj
    out_ref,
):
    x = x_ref[...].astype(jnp.float32)

    # in_proj -> (folded BN) -> ReLU    (dropout is identity in eval mode)
    y = jnp.dot(x, w_in_ref[...], preferred_element_type=jnp.float32) + b_in_ref[...]
    y = jnp.maximum(y, 0.0)

    # residual "Linear" block (w2)
    z = jnp.dot(y, w1_ref[...], preferred_element_type=jnp.float32) + b1_ref[...]
    z = jnp.maximum(z, 0.0)
    z = jnp.dot(z, w2_ref[...], preferred_element_type=jnp.float32) + b2_ref[...]
    z = jnp.maximum(z, 0.0)
    y = y + z

    # out_proj + residual with the module input
    o = jnp.dot(y, w_out_ref[...], preferred_element_type=jnp.float32) + b_out_ref[...]
    out_ref[...] = (x + o).astype(out_ref.dtype)


def pose_converter_forward(x, params):
    """x: [N, D] float32. params: dict of raw linear weights + BN scale/shift (see init_params)."""
    N, D = x.shape
    H = params["w_in"].shape[1]

    # ---- Host-side BN folding: W' = W * s (broadcast over out-cols), b' = b * s + t ----
    w_in = params["w_in"] * params["s1"]
    b_in = params["b_in"] * params["s1"] + params["t1"]
    w1 = params["w1"] * params["s2"]
    b1 = params["b1"] * params["s2"] + params["t2"]
    w2 = params["w2"] * params["s3"]
    b2 = params["b2"] * params["s3"] + params["t3"]
    w_out = params["w_out"]
    b_out = params["b_out"]

    # ---- Pad feature dim to a multiple of 128 (lane-dense loads/stores) ----
    Dp = _round_up(max(D, 128), 128)
    if Dp != D:
        pad = Dp - D
        x_p = jnp.pad(x, ((0, 0), (0, pad)))
        w_in_p = jnp.pad(w_in, ((0, pad), (0, 0)))       # extra input rows are zero
        w_out_p = jnp.pad(w_out, ((0, 0), (0, pad)))     # extra output cols are zero
        b_out_p = jnp.pad(b_out, ((0, 0), (0, pad)))     # -> padded out lanes == padded x (zero)
    else:
        x_p, w_in_p, w_out_p, b_out_p = x, w_in, w_out, b_out

    # ---- Batch tiling: balance tile sizes so row padding stays <= 7 rows ----
    num_tiles = pl.cdiv(N, TILE_N_MAX)
    tile_n = _round_up(pl.cdiv(N, num_tiles), 8)
    Np = tile_n * num_tiles
    if Np != N:
        x_p = jnp.pad(x_p, ((0, Np - N), (0, 0)))
    grid_n = num_tiles

    args = (x_p, w_in_p, b_in, w1, b1, w2, b2, w_out_p, b_out_p)

    def resident_spec(shape):
        # Weights / biases: same block every grid step -> fetched once, stay VMEM-resident.
        return pl.BlockSpec(shape, lambda i: (0, 0))

    in_specs = [pl.BlockSpec((tile_n, Dp), lambda i: (i, 0))] + [
        resident_spec(a.shape) for a in args[1:]
    ]
    out_spec = pl.BlockSpec((tile_n, Dp), lambda i: (i, 0))

    flops = 2 * Np * (Dp * H + H * H + H * H + H * Dp)
    weight_bytes = 4 * (Dp * H + H + H * H + H + H * H + H + H * Dp + Dp)
    bytes_accessed = weight_bytes + 2 * Np * Dp * 4

    out_padded = pl.pallas_call(
        _pose_converter_kernel,
        out_shape=jax.ShapeDtypeStruct((Np, Dp), x.dtype),
        grid_spec=pltpu.PrefetchScalarGridSpec(
            num_scalar_prefetch=0,
            grid=(grid_n,),
            in_specs=in_specs,
            out_specs=out_spec,
        ),
        compiler_params=pltpu.CompilerParams(
            dimension_semantics=("parallel",),
        ),
        cost_estimate=pl.CostEstimate(
            flops=int(flops), transcendentals=0, bytes_accessed=int(bytes_accessed)
        ),
    )(*args)

    return out_padded[:N, :D]


def init_params(key, input_size, linear_size, eps=1e-5):
    """Deterministic synthetic parameter init (PyTorch-shaped linears + eval-mode BN)."""
    ks = jax.random.split(key, 12)

    def lin(k, fan_in, fan_out):
        scale = 1.0 / jnp.sqrt(fan_in)
        kw, kb = jax.random.split(k)
        w = jax.random.uniform(kw, (fan_in, fan_out), jnp.float32, -scale, scale)
        b = jax.random.uniform(kb, (1, fan_out), jnp.float32, -scale, scale)
        return w, b

    def bn(k, feat):
        kg, kb = jax.random.split(k)
        gamma = 1.0 + 0.1 * jax.random.normal(kg, (1, feat), jnp.float32)
        beta = 0.1 * jax.random.normal(kb, (1, feat), jnp.float32)
        running_mean = jnp.zeros((1, feat), jnp.float32)
        running_var = jnp.ones((1, feat), jnp.float32)
        scale = gamma / jnp.sqrt(running_var + eps)
        shift = beta - running_mean * scale
        return scale, shift

    w_in, b_in = lin(ks[0], input_size, linear_size)
    s1, t1 = bn(ks[1], linear_size)
    w1, b1 = lin(ks[2], linear_size, linear_size)
    s2, t2 = bn(ks[3], linear_size)
    w2, b2 = lin(ks[4], linear_size, linear_size)
    s3, t3 = bn(ks[5], linear_size)
    w_out, b_out = lin(ks[6], linear_size, input_size)

    return dict(
        w_in=w_in, b_in=b_in, s1=s1, t1=t1,
        w1=w1, b1=b1, s2=s2, t2=t2,
        w2=w2, b2=b2, s3=s3, t3=t3,
        w_out=w_out, b_out=b_out,
    )


def reference_forward(x, p):
    """Pure-JAX reference of the same eval-mode forward pass (unfolded BN)."""
    y = jnp.maximum((x @ p["w_in"] + p["b_in"]) * p["s1"] + p["t1"], 0.0)
    z = jnp.maximum((y @ p["w1"] + p["b1"]) * p["s2"] + p["t2"], 0.0)
    z = jnp.maximum((z @ p["w2"] + p["b2"]) * p["s3"] + p["t3"], 0.0)
    y = y + z
    return x + (y @ p["w_out"] + p["b_out"])


if __name__ == "__main__":
    # input_size = 48 (16 joints * 3), linear_size = 128.
    D, H = 48, 128
    key = jax.random.PRNGKey(0)
    kx, kp, kx2 = jax.random.split(key, 3)
    params = init_params(kp, input_size=D, linear_size=H)

    fwd = jax.jit(pose_converter_forward)

    # Small case: exercises batch padding (20 -> 24) and feature padding (48 -> 128).
    x = jax.random.normal(kx, (20, D), jnp.float32)
    out = jax.block_until_ready(fwd(x, params))
    ref = reference_forward(x, params)
    assert out.shape == x.shape and out.dtype == jnp.float32
    assert jnp.allclose(out, ref, atol=2e-4, rtol=2e-4)

    # Larger case: exercises the multi-step batch grid (1100 -> 2 balanced tiles of 552).
    x2 = jax.random.normal(kx2, (1100, D), jnp.float32)
    out2 = jax.block_until_ready(fwd(x2, params))
    ref2 = reference_forward(x2, params)
    assert out2.shape == x2.shape
    assert jnp.allclose(out2, ref2, atol=2e-4, rtol=2e-4)

    print("KERNEL_OK")
</pallas_src>

<mosaic_0001>
module attributes {stable_mosaic.version = 11 : i64} {
  func.func @_pose_converter_kernel(%arg0: i32, %arg1: memref<24x128xf32, #tpu.memory_space<vmem>>, %arg2: memref<128x128xf32, #tpu.memory_space<vmem>>, %arg3: memref<1x128xf32, #tpu.memory_space<vmem>>, %arg4: memref<128x128xf32, #tpu.memory_space<vmem>>, %arg5: memref<1x128xf32, #tpu.memory_space<vmem>>, %arg6: memref<128x128xf32, #tpu.memory_space<vmem>>, %arg7: memref<1x128xf32, #tpu.memory_space<vmem>>, %arg8: memref<128x128xf32, #tpu.memory_space<vmem>>, %arg9: memref<1x128xf32, #tpu.memory_space<vmem>>, %arg10: memref<24x128xf32, #tpu.memory_space<vmem>>) attributes {dimension_semantics = [#tpu.dimension_semantics<parallel>], iteration_bounds = array<i64: 1>, scalar_prefetch = 0 : i64, scratch_operands = 0 : i64, tpu.core_type = #tpu.core_type<tc>, window_params = [{transform_indices = @transform_0, window_bounds = array<i64: 24, 128>}, {pipeline_mode = #tpu.pipeline_mode<synchronous>, transform_indices = @transform_1, window_bounds = array<i64: 128, 128>}, {pipeline_mode = #tpu.pipeline_mode<synchronous>, transform_indices = @transform_2, window_bounds = array<i64: 1, 128>}, {pipeline_mode = #tpu.pipeline_mode<synchronous>, transform_indices = @transform_3, window_bounds = array<i64: 128, 128>}, {pipeline_mode = #tpu.pipeline_mode<synchronous>, transform_indices = @transform_4, window_bounds = array<i64: 1, 128>}, {pipeline_mode = #tpu.pipeline_mode<synchronous>, transform_indices = @transform_5, window_bounds = array<i64: 128, 128>}, {pipeline_mode = #tpu.pipeline_mode<synchronous>, transform_indices = @transform_6, window_bounds = array<i64: 1, 128>}, {pipeline_mode = #tpu.pipeline_mode<synchronous>, transform_indices = @transform_7, window_bounds = array<i64: 128, 128>}, {pipeline_mode = #tpu.pipeline_mode<synchronous>, transform_indices = @transform_8, window_bounds = array<i64: 1, 128>}, {transform_indices = @transform_9, window_bounds = array<i64: 24, 128>}]} {
    %c0 = arith.constant 0 : index
    %c0_0 = arith.constant 0 : index
    %0 = vector.load %arg1[%c0, %c0_0] : memref<24x128xf32, #tpu.memory_space<vmem>>, vector<24x128xf32>
    %c0_1 = arith.constant 0 : index
    %c0_2 = arith.constant 0 : index
    %1 = vector.load %arg2[%c0_1, %c0_2] : memref<128x128xf32, #tpu.memory_space<vmem>>, vector<128x128xf32>
    %cst = arith.constant dense<0.000000e+00> : vector<24x128xf32>
    %2 = tpu.matmul %0, %1, %cst {dimension_numbers = #tpu.dot_dimension_numbers<[1], [0], [0], [1], [0, 0, 1, 1], [], []>} : vector<24x128xf32>, vector<128x128xf32>, vector<24x128xf32> -> vector<24x128xf32>
    %c0_3 = arith.constant 0 : index
    %c0_4 = arith.constant 0 : index
    %3 = vector.load %arg3[%c0_3, %c0_4] : memref<1x128xf32, #tpu.memory_space<vmem>>, vector<1x128xf32>
    %4 = vector.broadcast %3 : vector<1x128xf32> to vector<24x128xf32>
    %5 = arith.addf %2, %4 : vector<24x128xf32>
    %cst_5 = arith.constant 0.000000e+00 : f32
    %6 = vector.broadcast %cst_5 : f32 to vector<24x128xf32>
    %7 = arith.maximumf %5, %6 : vector<24x128xf32>
    %c0_6 = arith.constant 0 : index
    %c0_7 = arith.constant 0 : index
    %8 = vector.load %arg4[%c0_6, %c0_7] : memref<128x128xf32, #tpu.memory_space<vmem>>, vector<128x128xf32>
    %cst_8 = arith.constant dense<0.000000e+00> : vector<24x128xf32>
    %9 = tpu.matmul %7, %8, %cst_8 {dimension_numbers = #tpu.dot_dimension_numbers<[1], [0], [0], [1], [0, 0, 1, 1], [], []>} : vector<24x128xf32>, vector<128x128xf32>, vector<24x128xf32> -> vector<24x128xf32>
    %c0_9 = arith.constant 0 : index
    %c0_10 = arith.constant 0 : index
    %10 = vector.load %arg5[%c0_9, %c0_10] : memref<1x128xf32, #tpu.memory_space<vmem>>, vector<1x128xf32>
    %11 = vector.broadcast %10 : vector<1x128xf32> to vector<24x128xf32>
    %12 = arith.addf %9, %11 : vector<24x128xf32>
    %cst_11 = arith.constant 0.000000e+00 : f32
    %13 = vector.broadcast %cst_11 : f32 to vector<24x128xf32>
    %14 = arith.maximumf %12, %13 : vector<24x128xf32>
    %c0_12 = arith.constant 0 : index
    %c0_13 = arith.constant 0 : index
    %15 = vector.load %arg6[%c0_12, %c0_13] : memref<128x128xf32, #tpu.memory_space<vmem>>, vector<128x128xf32>
    %cst_14 = arith.constant dense<0.000000e+00> : vector<24x128xf32>
    %16 = tpu.matmul %14, %15, %cst_14 {dimension_numbers = #tpu.dot_dimension_numbers<[1], [0], [0], [1], [0, 0, 1, 1], [], []>} : vector<24x128xf32>, vector<128x128xf32>, vector<24x128xf32> -> vector<24x128xf32>
    %c0_15 = arith.constant 0 : index
    %c0_16 = arith.constant 0 : index
    %17 = vector.load %arg7[%c0_15, %c0_16] : memref<1x128xf32, #tpu.memory_space<vmem>>, vector<1x128xf32>
    %18 = vector.broadcast %17 : vector<1x128xf32> to vector<24x128xf32>
    %19 = arith.addf %16, %18 : vector<24x128xf32>
    %cst_17 = arith.constant 0.000000e+00 : f32
    %20 = vector.broadcast %cst_17 : f32 to vector<24x128xf32>
    %21 = arith.maximumf %19, %20 : vector<24x128xf32>
    %22 = arith.addf %7, %21 : vector<24x128xf32>
    %c0_18 = arith.constant 0 : index
    %c0_19 = arith.constant 0 : index
    %23 = vector.load %arg8[%c0_18, %c0_19] : memref<128x128xf32, #tpu.memory_space<vmem>>, vector<128x128xf32>
    %cst_20 = arith.constant dense<0.000000e+00> : vector<24x128xf32>
    %24 = tpu.matmul %22, %23, %cst_20 {dimension_numbers = #tpu.dot_dimension_numbers<[1], [0], [0], [1], [0, 0, 1, 1], [], []>} : vector<24x128xf32>, vector<128x128xf32>, vector<24x128xf32> -> vector<24x128xf32>
    %c0_21 = arith.constant 0 : index
    %c0_22 = arith.constant 0 : index
    %25 = vector.load %arg9[%c0_21, %c0_22] : memref<1x128xf32, #tpu.memory_space<vmem>>, vector<1x128xf32>
    %26 = vector.broadcast %25 : vector<1x128xf32> to vector<24x128xf32>
    %27 = arith.addf %24, %26 : vector<24x128xf32>
    %28 = arith.addf %0, %27 : vector<24x128xf32>
    %c0_23 = arith.constant 0 : index
    %c0_24 = arith.constant 0 : index
    %29 = vector.load %arg10[%c0_23, %c0_24] : memref<24x128xf32, #tpu.memory_space<vmem>>, vector<24x128xf32>
    tpu.vector_store %arg10[%c0_23, %c0_24], %28 {strides = array<i32>} : memref<24x128xf32, #tpu.memory_space<vmem>>, vector<24x128xf32>,
    return
  }
  func.func @transform_0(%arg0: i32) -> (i32, i32) {
    %c0_i32 = arith.constant 0 : i32
    %c0_i32_0 = arith.constant 0 : i32
    return %arg0, %c0_i32 : i32, i32
  }
  func.func @transform_1(%arg0: i32) -> (i32, i32) {
    %c0_i32 = arith.constant 0 : i32
    %c0_i32_0 = arith.constant 0 : i32
    %c0_i32_1 = arith.constant 0 : i32
    return %c0_i32, %c0_i32_0 : i32, i32
  }
  func.func @transform_2(%arg0: i32) -> (i32, i32) {
    %c0_i32 = arith.constant 0 : i32
    %c0_i32_0 = arith.constant 0 : i32
    %c0_i32_1 = arith.constant 0 : i32
    return %c0_i32, %c0_i32_0 : i32, i32
  }
  func.func @transform_3(%arg0: i32) -> (i32, i32) {
    %c0_i32 = arith.constant 0 : i32
    %c0_i32_0 = arith.constant 0 : i32
    %c0_i32_1 = arith.constant 0 : i32
    return %c0_i32, %c0_i32_0 : i32, i32
  }
  func.func @transform_4(%arg0: i32) -> (i32, i32) {
    %c0_i32 = arith.constant 0 : i32
    %c0_i32_0 = arith.constant 0 : i32
    %c0_i32_1 = arith.constant 0 : i32
    return %c0_i32, %c0_i32_0 : i32, i32
  }
  func.func @transform_5(%arg0: i32) -> (i32, i32) {
    %c0_i32 = arith.constant 0 : i32
    %c0_i32_0 = arith.constant 0 : i32
    %c0_i32_1 = arith.constant 0 : i32
    return %c0_i32, %c0_i32_0 : i32, i32
  }
  func.func @transform_6(%arg0: i32) -> (i32, i32) {
    %c0_i32 = arith.constant 0 : i32
    %c0_i32_0 = arith.constant 0 : i32
    %c0_i32_1 = arith.constant 0 : i32
    return %c0_i32, %c0_i32_0 : i32, i32
  }
  func.func @transform_7(%arg0: i32) -> (i32, i32) {
    %c0_i32 = arith.constant 0 : i32
    %c0_i32_0 = arith.constant 0 : i32
    %c0_i32_1 = arith.constant 0 : i32
    return %c0_i32, %c0_i32_0 : i32, i32
  }
  func.func @transform_8(%arg0: i32) -> (i32, i32) {
    %c0_i32 = arith.constant 0 : i32
    %c0_i32_0 = arith.constant 0 : i32
    %c0_i32_1 = arith.constant 0 : i32
    return %c0_i32, %c0_i32_0 : i32, i32
  }
  func.func @transform_9(%arg0: i32) -> (i32, i32) {
    %c0_i32 = arith.constant 0 : i32
    %c0_i32_0 = arith.constant 0 : i32
    return %arg0, %c0_i32 : i32, i32
  }
}

</mosaic_0001>

<bundles_post_ra>
// kernel: pose_converter_forward.1
= control target key start
LH: loop header
LB: loop body
LE: loop exit
PB: predicated region body
PF: predicated region fallthrough
CT: control target
= control target key end

     0   :  { %s591_s0 = inlined_call_operand.vmem [shape: f32[24,128], index: 0, kind: input, shape index: {}]   ;;  %s592_s1 = inlined_call_operand.vmem [shape: f32[128,128], index: 1, kind: input, shape index: {}]   ;;  %s593_s2 = inlined_call_operand.vmem [shape: f32[1,128], index: 2, kind: input, shape index: {}]   ;;  %s594_s3 = inlined_call_operand.vmem [shape: f32[128,128], index: 3, kind: input, shape index: {}]   ;;  %s595_s4 = inlined_call_operand.vmem [shape: f32[1,128], index: 4, kind: input, shape index: {}]   ;;  %s596_s5 = inlined_call_operand.vmem [shape: f32[128,128], index: 5, kind: input, shape index: {}]   ;;  %s597_s6 = inlined_call_operand.vmem [shape: f32[1,128], index: 6, kind: input, shape index: {}]   ;;  %s598_s7 = inlined_call_operand.vmem [shape: f32[128,128], index: 7, kind: input, shape index: {}]   ;;  %s599_s8 = inlined_call_operand.vmem [shape: f32[1,128], index: 8, kind: input, shape index: {}]   ;;  %s600_s9 = inlined_call_operand.hbm [shape: f32[24,128], index: 9, kind: output, shape index: {}]  }
   0x1   :  { %v51_v0 = vld [vmem:[%s592_s1 + $0x78] sm:$0xff]  ;;  %v50_v1 = vld [vmem:[%s592_s1 + $0x70] sm:$0xff]  ;;  %v49_v2 = vld [vmem:[%s592_s1 + $0x68] sm:$0xff] }
   0x2   :  { %56 = vmatpush.msra.mxu0 %v51_v0  ;;  %v48_v3 = vld [vmem:[%s592_s1 + $0x60] sm:$0xff]  ;;  %v47_v4 = vld [vmem:[%s592_s1 + $0x58] sm:$0xff] }
   0x4   :  { %57 = vmatpush.msra.mxu0 %v50_v1 }
   0x6   :  { %58 = vmatpush.msra.mxu0 %v49_v2 }
   0x8   :  { %59 = vmatpush.msra.mxu0 %v48_v3 }
   0x9   :  { %14 = vsyncpa [#allocation3], 0  ;;  %v46_v5 = vld [vmem:[%s592_s1 + $0x50] sm:$0xff]  ;;  %v45_v6 = vld [vmem:[%s592_s1 + $0x48] sm:$0xff]  ;;  %s289_s29 = smov [#allocation2]   ;;  %s244_s11 = sshll.u32 %s600_s9, 4  ;;  %s245_s11 = int_to_ptr.hbm [resolvable:$true] %s244_s11 }
   0xa   :  { %60 = vmatpush.msra.mxu0 %v47_v4  ;;  %v44_v7 = vld [vmem:[%s592_s1 + $0x40] sm:$0xff]  ;;  %v43_v8 = vld [vmem:[%s592_s1 + $0x38] sm:$0xff]  ;;  %v42_v9 = vld [vmem:[%s592_s1 + $0x30] sm:$0xff]  ;;  %s291_s12 = smov 8  }
   0xb   :  { %v100_v10 = vld [vmem:[%s594_s3 + $0x78] sm:$0xff]  ;;  %v99_v11 = vld [vmem:[%s594_s3 + $0x70] sm:$0xff]  ;;  %v41_v12 = vld [vmem:[%s592_s1 + $0x28] sm:$0xff] }
   0xc   :  { %61 = vmatpush.msra.mxu0 %v46_v5  ;;  %105 = vmatpush.msra.mxu1 %v100_v10  ;;  %v98_v13 = vld [vmem:[%s594_s3 + $0x68] sm:$0xff]  ;;  %v40_v14 = vld [vmem:[%s592_s1 + $0x20] sm:$0xff]  ;;  %v39_v16 = vld [vmem:[%s592_s1 + $0x18] sm:$0xff] }
   0xd   :  { %v97_v15 = vld [vmem:[%s594_s3 + $0x60] sm:$0xff]  ;;  %v96_v17 = vld [vmem:[%s594_s3 + $0x58] sm:$0xff]  ;;  %v38_v18 = vld [vmem:[%s592_s1 + $0x10] sm:$0xff] }
   0xe   :  { %62 = vmatpush.msra.mxu0 %v45_v6  ;;  %106 = vmatpush.msra.mxu1 %v99_v11  ;;  %v95_v19 = vld [vmem:[%s594_s3 + $0x50] sm:$0xff]  ;;  %v37_v20 = vld [vmem:[%s592_s1 + $0x8] sm:$0xff]  ;;  %v36_v22 = vld [vmem:[%s592_s1] sm:$0xff] }
   0xf   :  { %v94_v21 = vld [vmem:[%s594_s3 + $0x48] sm:$0xff]  ;;  %v93_v23 = vld [vmem:[%s594_s3 + $0x40] sm:$0xff]  ;;  %v92_v25 = vld [vmem:[%s594_s3 + $0x38] sm:$0xff] }
  0x10   :  { %63 = vmatpush.msra.mxu0 %v44_v7  ;;  %107 = vmatpush.msra.mxu1 %v98_v13  ;;  %v417_v24 = vld [vmem:[%s591_s0] sm:$0xff]  ;;  %v91_v26 = vld [vmem:[%s594_s3 + $0x30] sm:$0xff]  ;;  %v90_v27 = vld [vmem:[%s594_s3 + $0x28] sm:$0xff] }
  0x11   :  { %v89_v28 = vld [vmem:[%s594_s3 + $0x20] sm:$0xff]  ;;  %v435_v29 = vld [vmem:[%s591_s0 + $0x8] sm:$0xff]  ;;  %v88_v30 = vld [vmem:[%s594_s3 + $0x18] sm:$0xff] }
  0x12   :  { %64 = vmatpush.msra.mxu0 %v43_v8  ;;  %108 = vmatpush.msra.mxu1 %v97_v15  ;;  %v444_v31 = vld [vmem:[%s591_s0 + $0x10] sm:$0xff]  ;;  %v86_v33 = vld [vmem:[%s594_s3 + $0x8] sm:$0xff]  ;;  %v85_v34 = vld [vmem:[%s594_s3] sm:$0xff] }
  0x13   :  { %v87_v32 = vld [vmem:[%s594_s3 + $0x10] sm:$0xff]  ;;  %v149_v35 = vld [vmem:[%s596_s5 + $0x78] sm:$0xff]  ;;  %v147_v37 = vld [vmem:[%s596_s5 + $0x68] sm:$0xff] }
  0x14   :  { %65 = vmatpush.msra.mxu0 %v42_v9  ;;  %109 = vmatpush.msra.mxu1 %v96_v17  ;;  %v148_v36 = vld [vmem:[%s596_s5 + $0x70] sm:$0xff]  ;;  %v146_v38 = vld [vmem:[%s596_s5 + $0x60] sm:$0xff]  ;;  %v145_v39 = vld [vmem:[%s596_s5 + $0x58] sm:$0xff] }
  0x15   :  { %154 = vmatpush.msra.mxu2 %v149_v35  ;;  %v259_v40 = vld [vmem:[%s593_s2] ss:$0 sm:$0xff]  ;;  %v144_v41 = vld [vmem:[%s596_s5 + $0x50] sm:$0xff]  ;;  %v143_v42 = vld [vmem:[%s596_s5 + $0x48] sm:$0xff]  ;;  %s242_s2 = sshll.u32 %s289_s29, 4  ;;  %s243_s2 = int_to_ptr.vmem [resolvable:$true] %s242_s2 }
  0x16   :  { %66 = vmatpush.msra.mxu0 %v41_v12  ;;  %110 = vmatpush.msra.mxu1 %v95_v19  ;;  %v142_v45 = vld [vmem:[%s596_s5 + $0x40] sm:$0xff]  ;;  %v141_v47 = vld [vmem:[%s596_s5 + $0x38] sm:$0xff]  ;;  %v140_v48 = vld [vmem:[%s596_s5 + $0x30] sm:$0xff] }
  0x17   :  { %155 = vmatpush.msra.mxu2 %v148_v36  ;;  %v139_v49 = vld [vmem:[%s596_s5 + $0x28] sm:$0xff]  ;;  %v138_v52 = vld [vmem:[%s596_s5 + $0x20] sm:$0xff]  ;;  %v137_v54 = vld [vmem:[%s596_s5 + $0x18] sm:$0xff] }
  0x18   :  { %67 = vmatpush.msra.mxu0 %v40_v14  ;;  %111 = vmatpush.msra.mxu1 %v94_v21  ;;  %v136_v58 = vld [vmem:[%s596_s5 + $0x10] sm:$0xff]  ;;  %v135_v59 = vld [vmem:[%s596_s5 + $0x8] sm:$0xff]  ;;  %v134_v60 = vld [vmem:[%s596_s5] sm:$0xff] }
  0x19   :  { %156 = vmatpush.msra.mxu2 %v147_v37  ;;  %v201_v61 = vld [vmem:[%s598_s7 + $0x78] sm:$0xff]  ;;  %v200_v62 = vld [vmem:[%s598_s7 + $0x70] sm:$0xff]  ;;  %v199_v63 = vld [vmem:[%s598_s7 + $0x68] sm:$0xff] }
  0x1a   :  { %68 = vmatpush.msra.mxu0 %v39_v16  ;;  %112 = vmatpush.msra.mxu1 %v93_v23  ;;  %v198_v0 = vld [vmem:[%s598_s7 + $0x60] sm:$0xff]  ;;  %v197_v1 = vld [vmem:[%s598_s7 + $0x58] sm:$0xff]  ;;  %v196_v3 = vld [vmem:[%s598_s7 + $0x50] sm:$0xff] }
  0x1b   :  { %157 = vmatpush.msra.mxu2 %v146_v38  ;;  %206 = vmatpush.msra.mxu3 %v201_v61  ;;  %v260_v2 = vld [vmem:[%s595_s4] ss:$0 sm:$0xff]  ;;  %v195_v4 = vld [vmem:[%s598_s7 + $0x48] sm:$0xff]  ;;  %v193_v9 = vld [vmem:[%s598_s7 + $0x38] sm:$0xff] }
  0x1c   :  { %69 = vmatpush.msra.mxu0 %v38_v18  ;;  %113 = vmatpush.msra.mxu1 %v92_v25  ;;  %v194_v7 = vld [vmem:[%s598_s7 + $0x40] sm:$0xff]  ;;  %v192_v10 = vld [vmem:[%s598_s7 + $0x30] sm:$0xff]  ;;  %v191_v11 = vld [vmem:[%s598_s7 + $0x28] sm:$0xff] }
  0x1d   :  { %158 = vmatpush.msra.mxu2 %v145_v39  ;;  %207 = vmatpush.msra.mxu3 %v200_v62  ;;  %v190_v14 = vld [vmem:[%s598_s7 + $0x20] sm:$0xff]  ;;  %v189_v19 = vld [vmem:[%s598_s7 + $0x18] sm:$0xff]  ;;  %v187_v21 = vld [vmem:[%s598_s7 + $0x8] sm:$0xff] }
  0x1e   :  { %70 = vmatpush.msra.mxu0 %v37_v20  ;;  %114 = vmatpush.msra.mxu1 %v91_v26  ;;  %v188_v20 = vld [vmem:[%s598_s7 + $0x10] sm:$0xff]  ;;  %v261_v23 = vld [vmem:[%s597_s6] ss:$0 sm:$0xff] }
  0x1f   :  { %159 = vmatpush.msra.mxu2 %v144_v41  ;;  %208 = vmatpush.msra.mxu3 %v199_v63  ;;  %v262_v39 = vld [vmem:[%s599_s8] ss:$0 sm:$0xff]  ;;  %s290_s8 = smov 128  }
  0x20   :  { %71 = vmatpush.msra.mxu0 %v36_v22  ;;  %115 = vmatpush.msra.mxu1 %v90_v27  ;;  %v186_v22 = vld [vmem:[%s598_s7] sm:$0xff] }
  0x21   :  { %72 = vmatmul.f32.vlgmr.msra.gmra.mxu0 %v417_v24  ;;  %160 = vmatpush.msra.mxu2 %v143_v42 }
  0x22   :  { %116 = vmatpush.msra.mxu1 %v89_v28  ;;  %209 = vmatpush.msra.mxu3 %v198_v0 }
  0x23   :  { %161 = vmatpush.msra.mxu2 %v142_v45 }
  0x24   :  { %117 = vmatpush.msra.mxu1 %v88_v30  ;;  %210 = vmatpush.msra.mxu3 %v197_v1 }
  0x25   :  { %162 = vmatpush.msra.mxu2 %v141_v47 }
  0x26   :  { %118 = vmatpush.msra.mxu1 %v87_v32  ;;  %211 = vmatpush.msra.mxu3 %v196_v3 }
  0x27   :  { %163 = vmatpush.msra.mxu2 %v140_v48 }
  0x28   :  { %119 = vmatpush.msra.mxu1 %v86_v33  ;;  %212 = vmatpush.msra.mxu3 %v195_v4 }
  0x29   :  { %75 = vmatmul.f32.gmra.mxu0 %v435_v29  ;;  %164 = vmatpush.msra.mxu2 %v139_v49 }
  0x2a   :  { %120 = vmatpush.msra.mxu1 %v85_v34  ;;  %213 = vmatpush.msra.mxu3 %v194_v7 }
  0x2b   :  { %165 = vmatpush.msra.mxu2 %v138_v52 }
  0x2c   :  { %214 = vmatpush.msra.mxu3 %v193_v9 }
  0x2d   :  { %166 = vmatpush.msra.mxu2 %v137_v54 }
  0x2e   :  { %215 = vmatpush.msra.mxu3 %v192_v10 }
  0x2f   :  { %167 = vmatpush.msra.mxu2 %v136_v58 }
  0x30   :  { %216 = vmatpush.msra.mxu3 %v191_v11 }
  0x31   :  { %78 = vmatmul.f32.gmra.mxu0 %v444_v31  ;;  %168 = vmatpush.msra.mxu2 %v135_v59 }
  0x32   :  { %217 = vmatpush.msra.mxu3 %v190_v14 }
  0x33   :  { %169 = vmatpush.msra.mxu2 %v134_v60 }
  0x34   :  { %218 = vmatpush.msra.mxu3 %v189_v19 }
  0x36   :  { %219 = vmatpush.msra.mxu3 %v188_v20 }
  0x38   :  { %220 = vmatpush.msra.mxu3 %v187_v21 }
  0x3a   :  { %221 = vmatpush.msra.mxu3 %v186_v22 }
  0x9e   :  { %v73_v43 = vpop.f32.mrf.mxu0 }
  0x9f   :  { %v480_v44 = vadd.f32 %v259_v40, %v73_v43 }
  0xa1   :  { %v82_v46 = vmax.f32 %v480_v44, 0.0 }
  0xa3   :  { %121 = vmatmul.f32.vlgmr.msra.gmra.mxu1 %v82_v46 }
  0xa6   :  { %v76_v50 = vpop.f32.mrf.mxu0 }
  0xa7   :  { %v497_v51 = vadd.f32 %v259_v40, %v76_v50 }
  0xa9   :  { %v83_v53 = vmax.f32 %v497_v51, 0.0 }
  0xab   :  { %124 = vmatmul.f32.gmra.mxu1 %v83_v53 }
  0xae   :  { %v79_v55 = vpop.f32.mrf.mxu0 }
  0xaf   :  { %v508_v56 = vadd.f32 %v259_v40, %v79_v55 }
  0xb1   :  { %v84_v57 = vmax.f32 %v508_v56, 0.0 }
  0xb3   :  { %127 = vmatmul.f32.gmra.mxu1 %v84_v57 }
 0x120   :  { %v122_v5 = vpop.f32.mrf.mxu1 }
 0x121   :  { %v123_v6 = vadd.f32 %v260_v2, %v122_v5 }
 0x123   :  { %v131_v8 = vmax.f32 %v123_v6, 0.0 }
 0x125   :  { %170 = vmatmul.f32.vlgmr.msra.gmra.mxu2 %v131_v8 }
 0x128   :  { %v125_v12 = vpop.f32.mrf.mxu1 }
 0x129   :  { %v126_v13 = vadd.f32 %v260_v2, %v125_v12 }
 0x12b   :  { %v132_v15 = vmax.f32 %v126_v13, 0.0 }
 0x12d   :  { %173 = vmatmul.f32.gmra.mxu2 %v132_v15 }
 0x130   :  { %v128_v16 = vpop.f32.mrf.mxu1 }
 0x131   :  { %v129_v17 = vadd.f32 %v260_v2, %v128_v16 }
 0x133   :  { %v133_v18 = vmax.f32 %v129_v17, 0.0 }
 0x135   :  { %176 = vmatmul.f32.gmra.mxu2 %v133_v18 }
 0x1a8   :  { %v171_v25 = vpop.f32.mrf.mxu2 }
 0x1a9   :  { %v172_v26 = vadd.f32 %v261_v23, %v171_v25 }
 0x1ab   :  { %v180_v27 = vmax.f32 %v172_v26, 0.0 }
 0x1ad   :  { %v183_v28 = vadd.f32 %v180_v27, %v82_v46 }
 0x1af   :  { %222 = vmatmul.f32.vlgmr.msra.gmra.mxu3 %v183_v28 }
 0x1b0   :  { %v174_v30 = vpop.f32.mrf.mxu2 }
 0x1b1   :  { %v175_v32 = vadd.f32 %v261_v23, %v174_v30 }
 0x1b3   :  { %v181_v33 = vmax.f32 %v175_v32, 0.0 }
 0x1b5   :  { %v184_v34 = vadd.f32 %v181_v33, %v83_v53 }
 0x1b7   :  { %225 = vmatmul.f32.gmra.mxu3 %v184_v34 }
 0x1b8   :  { %v177_v35 = vpop.f32.mrf.mxu2 }
 0x1b9   :  { %v178_v36 = vadd.f32 %v261_v23, %v177_v35 }
 0x1bb   :  { %v182_v37 = vmax.f32 %v178_v36, 0.0 }
 0x1bd   :  { %v185_v38 = vadd.f32 %v182_v37, %v84_v57 }
 0x1bf   :  { %228 = vmatmul.f32.gmra.mxu3 %v185_v38 }
 0x232   :  { %v223_v40 = vpop.f32.mrf.mxu3 }
 0x233   :  { %v224_v41 = vadd.f32 %v262_v39, %v223_v40 }
 0x235   :  { %v232_v42 = vadd.f32 %v224_v41, %v417_v24 }
 0x237   :  { %235 = vst [vmem:[#allocation2] sm:$0xff] %v232_v42 }
 0x23a   :  { %v226_v43 = vpop.f32.mrf.mxu3 }
 0x23b   :  { %v227_v44 = vadd.f32 %v262_v39, %v226_v43 }
 0x23d   :  { %v233_v45 = vadd.f32 %v227_v44, %v435_v29 }
 0x23f   :  { %236 = vst [vmem:[#allocation2 + $0x8] sm:$0xff] %v233_v45 }
 0x242   :  { %v229_v46 = vpop.f32.mrf.mxu3 }
 0x243   :  { %v230_v47 = vadd.f32 %v262_v39, %v229_v46 }
 0x245   :  { %v234_v48 = vadd.f32 %v230_v47, %v444_v31 }
 0x247   :  { %237 = vst [vmem:[#allocation2 + $0x10] sm:$0xff] %v234_v48 }
 0x248   :  { %250 = dma.vmem_to_hbm [thread:$0]  %s243_s2, 384, %s245_s11, [#allocation3], %s290_s8, %s290_s8, %s291_s12  }
 0x249   :  { %287 = dma.done.wait [#allocation3], 384  }
 0x24a   :  { %288 = vsyncadd [#allocation3], 4294966912 }
 0x24b   :  { %255 = vsyncpa [#allocation3], 1 }

</bundles_post_ra>
